<compile_context>
chip_gen: v6e
topology: v6e:2x2x1
jax: 0.10.0
libtpu: 0.0.40
codegen_flags: <defaults>
</compile_context>

<pallas_src>
import math

import jax
import jax.numpy as jnp
from jax.experimental import pallas as pl
from jax.experimental.pallas import tpu as pltpu

_LANE = 128
_SUBLANE = 8
# Below this many bytes, pallas_call fixed dispatch dwarfs the copy itself.
_MIN_KERNEL_BYTES = 1 << 20  # 1 MiB


def _dma_copy_kernel(x_hbm, o_hbm, sem):
    # Pure HBM->HBM streaming copy on the DMA engine (no VMEM round-trip).
    cp = pltpu.make_async_copy(x_hbm, o_hbm, sem)
    cp.start()
    cp.wait()


def _resolve_size(total_elems, size):
    """Resolve a torch-style size tuple (may contain a single -1)."""
    size = tuple(int(s) for s in size)
    if -1 in size:
        known = 1
        for s in size:
            if s != -1:
                known *= s
        assert known > 0 and total_elems % known == 0, "view size incompatible"
        size = tuple(total_elems // known if s == -1 else s for s in size)
    assert math.prod(size) == total_elems, "view size incompatible with input"
    return size


def _choose_slab(total):
    """Pick a lane/sublane-friendly (rows, cols) factorization of `total`.

    Returns None when no multiple-of-128 factorization exists; the caller then
    uses the metadata-only reshape (a copy kernel could not win anyway).
    """
    if total % _LANE != 0:
        return None
    cols = _LANE
    # Widen cols (powers of two times 128 dividing `total`) while keeping at
    # least 8 full rows so the slab stays sublane-dense; cap the row length so
    # the DMA descriptor stays simple for very large arrays.
    while (total % (cols * 2) == 0
           and total // (cols * 2) >= _SUBLANE
           and cols * 2 <= 16384):
        cols *= 2
    return total // cols, cols


def view_pallas(x, size, *, copy=False, force_kernel=False):
    """Equivalent of torch.Tensor.view(size).

    Default (copy=False) is the metadata-only jnp.reshape — the exact analogue
    of torch's zero-cost .view() on contiguous tensors.  With copy=True a
    fresh buffer is materialized via a single HBM->HBM DMA Pallas kernel,
    bypassed for tiny tensors unless force_kernel=True.
    """
    total = int(x.size)
    out_size = _resolve_size(total, size)

    if not copy or total == 0:
        return jnp.reshape(x, out_size)

    itemsize = jnp.dtype(x.dtype).itemsize
    total_bytes = total * itemsize
    slab = _choose_slab(total)
    if slab is None or (total_bytes < _MIN_KERNEL_BYTES and not force_kernel):
        # Tiny tensor or no lane-dense factorization: metadata-only reshape.
        return jnp.reshape(x, out_size)

    rows, cols = slab
    x2d = jnp.reshape(x, (rows, cols))  # metadata-only

    out2d = pl.pallas_call(
        _dma_copy_kernel,
        out_shape=jax.ShapeDtypeStruct((rows, cols), x.dtype),
        in_specs=[pl.BlockSpec(memory_space=pl.ANY)],
        out_specs=pl.BlockSpec(memory_space=pl.ANY),
        scratch_shapes=[pltpu.SemaphoreType.DMA(())],
        cost_estimate=pl.CostEstimate(
            flops=0, transcendentals=0, bytes_accessed=2 * total_bytes),
    )(x2d)

    # The shape change itself is metadata-only, like torch .view().
    return jnp.reshape(out2d, out_size)


class View:
    """JAX/Pallas port of the PyTorch View module (zero-cost by default)."""

    def __init__(self, size):
        self.size = size

    def __call__(self, tensor):
        # Matches torch .view() semantics: no data movement.
        return view_pallas(tensor, self.size, copy=False)


if __name__ == "__main__":
    key = jax.random.PRNGKey(0)

    # Small NCHW input consistent with BVAE usage: (B, C, H, W) = (2, 4, 16, 16)
    x = jax.random.normal(key, (2, 4, 16, 16), dtype=jnp.float32)

    # 1) Typical BVAE encoder usage: flatten conv features (zero-cost path).
    out = View((-1, 4 * 16 * 16))(x)
    jax.block_until_ready(out)
    ref = x.reshape(-1, 4 * 16 * 16)
    assert out.shape == (2, 1024) and out.dtype == x.dtype
    assert bool(jnp.all(out == ref))

    # 2) Typical BVAE decoder usage: unflatten back to NCHW (zero-cost path).
    out2 = View((-1, 4, 16, 16))(out)
    jax.block_until_ready(out2)
    assert out2.shape == (2, 4, 16, 16)
    assert bool(jnp.all(out2 == x))

    # 3) Exercise the Pallas HBM->HBM DMA copy kernel once (explicitly
    #    requested materialized copy; force_kernel bypasses the small-tensor
    #    cutoff so the kernel actually runs on this small demo shape).
    out_k = view_pallas(x, (-1, 4 * 16 * 16), copy=True, force_kernel=True)
    jax.block_until_ready(out_k)
    assert out_k.shape == (2, 1024) and out_k.dtype == x.dtype
    assert bool(jnp.all(out_k == ref))

    # 4) Element count not a multiple of 128: exercises the metadata-only
    #    fallback path (no masked partial-access kernel).
    y = jax.random.normal(key, (2, 3, 5, 7), dtype=jnp.float32)
    out3 = view_pallas(y, (-1, 5 * 7), copy=True)
    jax.block_until_ready(out3)
    assert out3.shape == (6, 35)
    assert bool(jnp.all(out3 == y.reshape(6, 35)))

    print("KERNEL_OK")
</pallas_src>

<mosaic_0001>
module attributes {stable_mosaic.version = 11 : i64} {
  func.func @_dma_copy_kernel(%arg0: memref<8x256xf32, #tpu.memory_space<any>>, %arg1: memref<8x256xf32, #tpu.memory_space<any>>, %arg2: memref<!tpu.dma_semaphore, #tpu.memory_space<semaphore_mem>>) attributes {dimension_semantics = [], scalar_prefetch = 0 : i64, scratch_operands = 1 : i64, tpu.core_type = #tpu.core_type<tc>} {
    tpu.enqueue_dma source(%arg0 : memref<8x256xf32, #tpu.memory_space<any>>) target(%arg1 : memref<8x256xf32, #tpu.memory_space<any>>) target_semaphore(%arg2 : memref<!tpu.dma_semaphore, #tpu.memory_space<semaphore_mem>>)
    tpu.wait_dma2 semaphore(%arg2 : memref<!tpu.dma_semaphore, #tpu.memory_space<semaphore_mem>>) src(%arg0 : memref<8x256xf32, #tpu.memory_space<any>>) dst(%arg1 : memref<8x256xf32, #tpu.memory_space<any>>)
    return
  }
}

</mosaic_0001>

<bundles_post_ra>
// kernel: tpu_custom_call.1
= control target key start
LH: loop header
LB: loop body
LE: loop exit
PB: predicated region body
PF: predicated region fallthrough
CT: control target
= control target key end

     0   :  { %s29_s6 = smov [#allocation2]   ;;  %s30_s7 = smov 131072   ;;  %s48_s0 = inlined_call_operand.hbm [shape: f32[8,256], index: 0, kind: input, shape index: {}]   ;;  %s49_s1 = inlined_call_operand.hbm [shape: f32[8,256], index: 1, kind: output, shape index: {}]  }
   0x1   :  { %s31_s8 = smov 0  }
   0x2   :  { %12 = dma.general %s48_s0, 256, %s49_s1, %s29_s6, %s30_s7, [#allocation4], %s31_s8, 0  }
   0x3   :  { %27 = dma.done.wait [#allocation2], 256 }
   0x4   :  { %28 = vsyncadd [#allocation2], 4294967040 }
   0x5   :  { %17 = vsyncmov [#allocation2] }
   0x8   :  { %s18_s13 = vpop.sfrf %17 }
   0x9   :  { %p23_p0 = scmp.ne.s32.totalorder %s18_s13, 0 }
   0xb   :  { %22 = shalt.err (%p23_p0)  }

</bundles_post_ra>
